<compile_context>
chip_gen: v7x
topology: tpu7x:2x2x1
jax: 0.10.0
libtpu: 0.0.40
codegen_flags: <defaults>
</compile_context>

<pallas_src>
import jax
import jax.numpy as jnp
from jax.experimental import pallas as pl
from jax.experimental.pallas import tpu as pltpu

# --- hyperparameters implied by the module (small, TPU-friendly) -------------
N_EMBED = 32            # embedding dim C
N_HEAD = 4              # number of attention heads
HEAD_SIZE = N_EMBED // N_HEAD
BLOCK_SIZE = 8          # max sequence length T
HIDDEN = 4 * N_EMBED    # feed-forward hidden dim
EPS = 1e-5              # nn.LayerNorm default eps
NEG_INF = -1e30         # finite masked-score value (no NaN if a row is fully masked)
BT_MAX = 256            # batch elements per grid step -> Bt*T = 2048 MXU rows


def _layernorm(x, gamma, beta):
    mu = jnp.mean(x, axis=-1, keepdims=True)
    var = jnp.mean((x - mu) ** 2, axis=-1, keepdims=True)
    return (x - mu) * jax.lax.rsqrt(var + EPS) * gamma + beta


def block_kernel(x_ref, wqkv_ref, wo_ref, w1_ref, w2_ref, vec_ref, o_ref):
    Bt, T, C = x_ref.shape
    R = Bt * T
    H, D = N_HEAD, HEAD_SIZE

    # ---- unpack fused bias / LayerNorm parameter slab (8, 128) ----
    g1  = vec_ref[0:1, 0 * C:1 * C]          # (1, C)
    be1 = vec_ref[0:1, 1 * C:2 * C]
    g2  = vec_ref[0:1, 2 * C:3 * C]
    be2 = vec_ref[0:1, 3 * C:4 * C]
    bo  = vec_ref[1:2, 0 * C:1 * C]
    b2  = vec_ref[1:2, 1 * C:2 * C]
    b1  = vec_ref[2:3, 0:HIDDEN]             # (1, 4C)

    # fold batch tile into the MXU M dimension (cheap leading-dim merge)
    rows = x_ref[...].reshape(R, C)          # (Bt*T, C)

    # ---------------- x + SA(LN1(x)) ----------------
    h = _layernorm(rows, g1, be1)
    qkv = jnp.dot(h, wqkv_ref[...], preferred_element_type=jnp.float32)  # (R, 3C)

    rr = jax.lax.broadcasted_iota(jnp.int32, (T, T), 0)
    cc = jax.lax.broadcasted_iota(jnp.int32, (T, T), 1)
    causal = (rr >= cc)[None]                # (1, T, T) tril mask
    scale = float(D) ** -0.5

    head_outs = []
    for hh in range(H):                      # static unroll over heads, batched over Bt
        qh = qkv[:, 0 * C + hh * D:0 * C + (hh + 1) * D].reshape(Bt, T, D)
        kh = qkv[:, 1 * C + hh * D:1 * C + (hh + 1) * D].reshape(Bt, T, D)
        vh = qkv[:, 2 * C + hh * D:2 * C + (hh + 1) * D].reshape(Bt, T, D)
        s = jnp.einsum('bqd,bkd->bqk', qh, kh,
                       preferred_element_type=jnp.float32) * scale      # (Bt, T, T)
        s = jnp.where(causal, s, NEG_INF)
        s = s - jnp.max(s, axis=-1, keepdims=True)
        e = jnp.exp(s)
        p = e / jnp.sum(e, axis=-1, keepdims=True)
        head_outs.append(jnp.einsum('bqk,bkd->bqd', p, vh,
                                    preferred_element_type=jnp.float32))  # (Bt, T, D)
    att = jnp.concatenate(head_outs, axis=-1).reshape(R, C)              # cat over heads
    sa = jnp.dot(att, wo_ref[...], preferred_element_type=jnp.float32) + bo
    x1 = rows + sa                           # dropout = identity (eval)

    # ---------------- x + FFWD(LN2(x)) ----------------
    h2 = _layernorm(x1, g2, be2)
    f = jnp.dot(h2, w1_ref[...], preferred_element_type=jnp.float32) + b1
    f = jnp.maximum(f, 0.0)                  # ReLU
    f = jnp.dot(f, w2_ref[...], preferred_element_type=jnp.float32) + b2
    o_ref[...] = (x1 + f).reshape(Bt, T, C)  # dropout = identity (eval)


def pack_params(params):
    """Fuse QKV weights and pack the 7 small vectors into one (8, 128) slab."""
    wq, wk, wv, wo, bo, w1, b1, w2, b2, g1, be1, g2, be2 = params
    C, Hd = N_EMBED, HIDDEN
    wqkv = jnp.concatenate([wq, wk, wv], axis=1)          # (C, 3C)
    slab = jnp.zeros((8, 128), jnp.float32)
    slab = slab.at[0, 0 * C:1 * C].set(g1.reshape(C))
    slab = slab.at[0, 1 * C:2 * C].set(be1.reshape(C))
    slab = slab.at[0, 2 * C:3 * C].set(g2.reshape(C))
    slab = slab.at[0, 3 * C:4 * C].set(be2.reshape(C))
    slab = slab.at[1, 0 * C:1 * C].set(bo.reshape(C))
    slab = slab.at[1, 1 * C:2 * C].set(b2.reshape(C))
    slab = slab.at[2, 0:Hd].set(b1.reshape(Hd))
    return wqkv, wo, w1, w2, slab


def gpt_block(x, params):
    """x: (B, T, C) float32.  params: 13 raw arrays (see init_params)."""
    B, T, C = x.shape
    wqkv, wo, w1, w2, slab = pack_params(params)

    Bt = min(B, BT_MAX)                      # batch elements per grid step
    B_pad = ((B + Bt - 1) // Bt) * Bt
    if B_pad != B:                           # zero-pad batch to a multiple of Bt
        x = jnp.concatenate([x, jnp.zeros((B_pad - B, T, C), x.dtype)], axis=0)

    const2 = lambda i: (0, 0)                # weights: fetched once, VMEM-resident
    out = pl.pallas_call(
        block_kernel,
        out_shape=jax.ShapeDtypeStruct((B_pad, T, C), jnp.float32),
        grid_spec=pl.GridSpec(
            grid=(B_pad // Bt,),
            in_specs=[pl.BlockSpec((Bt, T, C), lambda i: (i, 0, 0)),
                      pl.BlockSpec(wqkv.shape, const2),
                      pl.BlockSpec(wo.shape, const2),
                      pl.BlockSpec(w1.shape, const2),
                      pl.BlockSpec(w2.shape, const2),
                      pl.BlockSpec(slab.shape, const2)],
            out_specs=pl.BlockSpec((Bt, T, C), lambda i: (i, 0, 0)),
        ),
        compiler_params=pltpu.CompilerParams(
            dimension_semantics=("parallel",)),
    )(x, wqkv, wo, w1, w2, slab)
    return out[:B]


def init_params(key):
    ks = jax.random.split(key, 12)
    sc = 0.02
    wq = sc * jax.random.normal(ks[0], (N_EMBED, N_EMBED), jnp.float32)
    wk = sc * jax.random.normal(ks[1], (N_EMBED, N_EMBED), jnp.float32)
    wv = sc * jax.random.normal(ks[2], (N_EMBED, N_EMBED), jnp.float32)
    wo = sc * jax.random.normal(ks[3], (N_EMBED, N_EMBED), jnp.float32)
    bo = sc * jax.random.normal(ks[4], (1, N_EMBED), jnp.float32)
    w1 = sc * jax.random.normal(ks[5], (N_EMBED, HIDDEN), jnp.float32)
    b1 = sc * jax.random.normal(ks[6], (1, HIDDEN), jnp.float32)
    w2 = sc * jax.random.normal(ks[7], (HIDDEN, N_EMBED), jnp.float32)
    b2 = sc * jax.random.normal(ks[8], (1, N_EMBED), jnp.float32)
    g1 = 1.0 + 0.1 * jax.random.normal(ks[9], (1, N_EMBED), jnp.float32)
    be1 = 0.1 * jax.random.normal(ks[10], (1, N_EMBED), jnp.float32)
    g2 = jnp.ones((1, N_EMBED), jnp.float32)
    be2 = 0.1 * jax.random.normal(ks[11], (1, N_EMBED), jnp.float32)
    return [wq, wk, wv, wo, bo, w1, b1, w2, b2, g1, be1, g2, be2]


def reference_block(x, params):
    """Pure-JAX reference mirroring the PyTorch Block forward (eval mode)."""
    wq, wk, wv, wo, bo, w1, b1, w2, b2, g1, be1, g2, be2 = params
    h = _layernorm(x, g1, be1)
    q = h @ wq; k = h @ wk; v = h @ wv                   # (B, T, C)
    B, T, C = x.shape
    qh = q.reshape(B, T, N_HEAD, HEAD_SIZE).transpose(0, 2, 1, 3)
    kh = k.reshape(B, T, N_HEAD, HEAD_SIZE).transpose(0, 2, 1, 3)
    vh = v.reshape(B, T, N_HEAD, HEAD_SIZE).transpose(0, 2, 1, 3)
    wei = jnp.einsum('bhqd,bhkd->bhqk', qh, kh) * (HEAD_SIZE ** -0.5)
    mask = jnp.tril(jnp.ones((T, T), bool))
    wei = jnp.where(mask, wei, -jnp.inf)
    wei = jax.nn.softmax(wei, axis=-1)
    out = jnp.einsum('bhqk,bhkd->bhqd', wei, vh)
    out = out.transpose(0, 2, 1, 3).reshape(B, T, C)
    x1 = x + (out @ wo + bo)
    h2 = _layernorm(x1, g2, be2)
    f = jnp.maximum(h2 @ w1 + b1, 0.0) @ w2 + b2
    return x1 + f


if __name__ == "__main__":
    key = jax.random.PRNGKey(0)
    kx, kp, kx2 = jax.random.split(key, 3)
    params = init_params(kp)

    # spec-sized check (B=2): Bt=2, grid=(1,)
    B, T, C = 2, BLOCK_SIZE, N_EMBED
    x = jax.random.normal(kx, (B, T, C), jnp.float32)
    out = jax.block_until_ready(gpt_block(x, params))
    ref = reference_block(x, params)
    assert out.shape == (B, T, C)
    assert jnp.allclose(out, ref, rtol=1e-5, atol=1e-5), \
        f"max abs err {jnp.max(jnp.abs(out - ref))}"

    # larger batched check exercising the tiled grid + padding path
    # (B=600 -> Bt=256, padded to 768, grid=(3,))
    B2 = 600
    x2 = jax.random.normal(kx2, (B2, T, C), jnp.float32)
    out2 = jax.block_until_ready(gpt_block(x2, params))
    ref2 = reference_block(x2, params)
    assert out2.shape == (B2, T, C)
    assert jnp.allclose(out2, ref2, rtol=1e-5, atol=1e-5), \
        f"max abs err {jnp.max(jnp.abs(out2 - ref2))}"

    print("KERNEL_OK")
</pallas_src>

<mosaic_0001>
module attributes {stable_mosaic.version = 11 : i64} {
  func.func @block_kernel(%arg0: i32, %arg1: memref<2x8x32xf32, #tpu.memory_space<vmem>>, %arg2: memref<32x96xf32, #tpu.memory_space<vmem>>, %arg3: memref<32x32xf32, #tpu.memory_space<vmem>>, %arg4: memref<32x128xf32, #tpu.memory_space<vmem>>, %arg5: memref<128x32xf32, #tpu.memory_space<vmem>>, %arg6: memref<8x128xf32, #tpu.memory_space<vmem>>, %arg7: memref<2x8x32xf32, #tpu.memory_space<vmem>>) attributes {dimension_semantics = [#tpu.dimension_semantics<parallel>], iteration_bounds = array<i64: 1>, scalar_prefetch = 0 : i64, scratch_operands = 0 : i64, tpu.core_type = #tpu.core_type<tc>, window_params = [{transform_indices = @transform_0, window_bounds = array<i64: 2, 8, 32>}, {pipeline_mode = #tpu.pipeline_mode<synchronous>, transform_indices = @transform_1, window_bounds = array<i64: 32, 96>}, {pipeline_mode = #tpu.pipeline_mode<synchronous>, transform_indices = @transform_2, window_bounds = array<i64: 32, 32>}, {pipeline_mode = #tpu.pipeline_mode<synchronous>, transform_indices = @transform_3, window_bounds = array<i64: 32, 128>}, {pipeline_mode = #tpu.pipeline_mode<synchronous>, transform_indices = @transform_4, window_bounds = array<i64: 128, 32>}, {pipeline_mode = #tpu.pipeline_mode<synchronous>, transform_indices = @transform_5, window_bounds = array<i64: 8, 128>}, {transform_indices = @transform_6, window_bounds = array<i64: 2, 8, 32>}]} {
    %c0 = arith.constant 0 : index
    %c0_0 = arith.constant 0 : index
    %0 = vector.load %arg6[%c0, %c0_0] : memref<8x128xf32, #tpu.memory_space<vmem>>, vector<1x32xf32>
    %c0_1 = arith.constant 0 : index
    %c32 = arith.constant 32 : index
    %1 = vector.load %arg6[%c0_1, %c32] : memref<8x128xf32, #tpu.memory_space<vmem>>, vector<1x32xf32>
    %c0_2 = arith.constant 0 : index
    %c64 = arith.constant 64 : index
    %2 = vector.load %arg6[%c0_2, %c64] : memref<8x128xf32, #tpu.memory_space<vmem>>, vector<1x32xf32>
    %c0_3 = arith.constant 0 : index
    %c96 = arith.constant 96 : index
    %3 = vector.load %arg6[%c0_3, %c96] : memref<8x128xf32, #tpu.memory_space<vmem>>, vector<1x32xf32>
    %c1 = arith.constant 1 : index
    %c0_4 = arith.constant 0 : index
    %4 = vector.load %arg6[%c1, %c0_4] : memref<8x128xf32, #tpu.memory_space<vmem>>, vector<1x32xf32>
    %c1_5 = arith.constant 1 : index
    %c32_6 = arith.constant 32 : index
    %5 = vector.load %arg6[%c1_5, %c32_6] : memref<8x128xf32, #tpu.memory_space<vmem>>, vector<1x32xf32>
    %c2 = arith.constant 2 : index
    %c0_7 = arith.constant 0 : index
    %6 = vector.load %arg6[%c2, %c0_7] : memref<8x128xf32, #tpu.memory_space<vmem>>, vector<1x128xf32>
    %c0_8 = arith.constant 0 : index
    %c0_9 = arith.constant 0 : index
    %c0_10 = arith.constant 0 : index
    %7 = vector.load %arg1[%c0_8, %c0_9, %c0_10] : memref<2x8x32xf32, #tpu.memory_space<vmem>>, vector<2x8x32xf32>
    %8 = vector.shape_cast %7 : vector<2x8x32xf32> to vector<16x32xf32>
    %cst = arith.constant dense<0.000000e+00> : vector<16xf32>
    %9 = vector.multi_reduction <add>, %8, %cst [1] : vector<16x32xf32> to vector<16xf32>
    %10 = vector.shape_cast %9 : vector<16xf32> to vector<16x1xf32>
    %cst_11 = arith.constant 3.200000e+01 : f32
    %11 = vector.broadcast %cst_11 : f32 to vector<16x1xf32>
    %12 = arith.divf %10, %11 : vector<16x1xf32>
    %13 = vector.broadcast %12 : vector<16x1xf32> to vector<16x32xf32>
    %14 = arith.subf %8, %13 : vector<16x32xf32>
    %15 = arith.mulf %14, %14 : vector<16x32xf32>
    %cst_12 = arith.constant dense<0.000000e+00> : vector<16xf32>
    %16 = vector.multi_reduction <add>, %15, %cst_12 [1] : vector<16x32xf32> to vector<16xf32>
    %17 = vector.shape_cast %16 : vector<16xf32> to vector<16x1xf32>
    %cst_13 = arith.constant 3.200000e+01 : f32
    %18 = vector.broadcast %cst_13 : f32 to vector<16x1xf32>
    %19 = arith.divf %17, %18 : vector<16x1xf32>
    %20 = vector.broadcast %12 : vector<16x1xf32> to vector<16x32xf32>
    %21 = arith.subf %8, %20 : vector<16x32xf32>
    %cst_14 = arith.constant 9.99999974E-6 : f32
    %22 = vector.broadcast %cst_14 : f32 to vector<16x1xf32>
    %23 = arith.addf %19, %22 : vector<16x1xf32>
    %24 = math.rsqrt %23 : vector<16x1xf32>
    %25 = vector.broadcast %24 : vector<16x1xf32> to vector<16x32xf32>
    %26 = arith.mulf %21, %25 : vector<16x32xf32>
    %27 = vector.broadcast %0 : vector<1x32xf32> to vector<16x32xf32>
    %28 = arith.mulf %26, %27 : vector<16x32xf32>
    %29 = vector.broadcast %1 : vector<1x32xf32> to vector<16x32xf32>
    %30 = arith.addf %28, %29 : vector<16x32xf32>
    %c0_15 = arith.constant 0 : index
    %c0_16 = arith.constant 0 : index
    %31 = vector.load %arg2[%c0_15, %c0_16] : memref<32x96xf32, #tpu.memory_space<vmem>>, vector<32x96xf32>
    %cst_17 = arith.constant dense<0.000000e+00> : vector<16x96xf32>
    %32 = tpu.matmul %30, %31, %cst_17 {dimension_numbers = #tpu.dot_dimension_numbers<[1], [0], [0], [1], [0, 0, 1, 1], [], []>} : vector<16x32xf32>, vector<32x96xf32>, vector<16x96xf32> -> vector<16x96xf32>
    %33 = tpu.iota {dimensions = array<i32: 0>} : vector<8x8xi32>
    %34 = tpu.iota {dimensions = array<i32: 1>} : vector<8x8xi32>
    %35 = arith.cmpi sge, %33, %34 : vector<8x8xi32>
    %36 = vector.shape_cast %35 : vector<8x8xi1> to vector<1x8x8xi1>
    %37 = vector.extract_strided_slice %32 {offsets = [0, 0], sizes = [16, 8], strides = [1, 1]} : vector<16x96xf32> to vector<16x8xf32>
    %38 = vector.shape_cast %37 : vector<16x8xf32> to vector<2x8x8xf32>
    %39 = vector.extract_strided_slice %32 {offsets = [0, 32], sizes = [16, 8], strides = [1, 1]} : vector<16x96xf32> to vector<16x8xf32>
    %40 = vector.shape_cast %39 : vector<16x8xf32> to vector<2x8x8xf32>
    %41 = vector.extract_strided_slice %32 {offsets = [0, 64], sizes = [16, 8], strides = [1, 1]} : vector<16x96xf32> to vector<16x8xf32>
    %42 = vector.shape_cast %41 : vector<16x8xf32> to vector<2x8x8xf32>
    "tpu.trace_start"() <{level = 10 : i32, message = "bqd,bkd->bqk"}> : () -> ()
    %cst_18 = arith.constant dense<0.000000e+00> : vector<2x8x8xf32>
    %43 = tpu.matmul %38, %40, %cst_18 {dimension_numbers = #tpu.dot_dimension_numbers<[2], [2], [1], [1], [0, 0, 0, 1, 1, 1], [0], [0]>} : vector<2x8x8xf32>, vector<2x8x8xf32>, vector<2x8x8xf32> -> vector<2x8x8xf32>
    "tpu.trace_stop"() : () -> ()
    %cst_19 = arith.constant 0.353553385 : f32
    %44 = vector.broadcast %cst_19 : f32 to vector<2x8x8xf32>
    %45 = arith.mulf %43, %44 : vector<2x8x8xf32>
    %cst_20 = arith.constant -1.000000e+30 : f32
    %46 = vector.shape_cast %36 : vector<1x8x8xi1> to vector<1x8x8xi1>
    %47 = vector.broadcast %46 : vector<1x8x8xi1> to vector<2x8x8xi1>
    %48 = vector.broadcast %cst_20 : f32 to vector<2x8x8xf32>
    %49 = arith.select %47, %45, %48 : vector<2x8x8xi1>, vector<2x8x8xf32>
    %cst_21 = arith.constant dense<0xFF800000> : vector<2x8xf32>
    %50 = vector.multi_reduction <maximumf>, %49, %cst_21 [2] : vector<2x8x8xf32> to vector<2x8xf32>
    %51 = vector.shape_cast %50 : vector<2x8xf32> to vector<2x8x1xf32>
    %52 = vector.broadcast %51 : vector<2x8x1xf32> to vector<2x8x8xf32>
    %53 = arith.subf %49, %52 : vector<2x8x8xf32>
    %54 = math.exp %53 : vector<2x8x8xf32>
    %cst_22 = arith.constant dense<0.000000e+00> : vector<2x8xf32>
    %55 = vector.multi_reduction <add>, %54, %cst_22 [2] : vector<2x8x8xf32> to vector<2x8xf32>
    %56 = vector.shape_cast %55 : vector<2x8xf32> to vector<2x8x1xf32>
    %57 = vector.broadcast %56 : vector<2x8x1xf32> to vector<2x8x8xf32>
    %58 = arith.divf %54, %57 : vector<2x8x8xf32>
    "tpu.trace_start"() <{level = 10 : i32, message = "bqk,bkd->bqd"}> : () -> ()
    %cst_23 = arith.constant dense<0.000000e+00> : vector<2x8x8xf32>
    %59 = tpu.matmul %58, %42, %cst_23 {dimension_numbers = #tpu.dot_dimension_numbers<[2], [1], [1], [2], [0, 0, 0, 1, 1, 2], [0], [0]>} : vector<2x8x8xf32>, vector<2x8x8xf32>, vector<2x8x8xf32> -> vector<2x8x8xf32>
    "tpu.trace_stop"() : () -> ()
    %60 = vector.extract_strided_slice %32 {offsets = [0, 8], sizes = [16, 8], strides = [1, 1]} : vector<16x96xf32> to vector<16x8xf32>
    %61 = vector.shape_cast %60 : vector<16x8xf32> to vector<2x8x8xf32>
    %62 = vector.extract_strided_slice %32 {offsets = [0, 40], sizes = [16, 8], strides = [1, 1]} : vector<16x96xf32> to vector<16x8xf32>
    %63 = vector.shape_cast %62 : vector<16x8xf32> to vector<2x8x8xf32>
    %64 = vector.extract_strided_slice %32 {offsets = [0, 72], sizes = [16, 8], strides = [1, 1]} : vector<16x96xf32> to vector<16x8xf32>
    %65 = vector.shape_cast %64 : vector<16x8xf32> to vector<2x8x8xf32>
    "tpu.trace_start"() <{level = 10 : i32, message = "bqd,bkd->bqk"}> : () -> ()
    %cst_24 = arith.constant dense<0.000000e+00> : vector<2x8x8xf32>
    %66 = tpu.matmul %61, %63, %cst_24 {dimension_numbers = #tpu.dot_dimension_numbers<[2], [2], [1], [1], [0, 0, 0, 1, 1, 1], [0], [0]>} : vector<2x8x8xf32>, vector<2x8x8xf32>, vector<2x8x8xf32> -> vector<2x8x8xf32>
    "tpu.trace_stop"() : () -> ()
    %cst_25 = arith.constant 0.353553385 : f32
    %67 = vector.broadcast %cst_25 : f32 to vector<2x8x8xf32>
    %68 = arith.mulf %66, %67 : vector<2x8x8xf32>
    %cst_26 = arith.constant -1.000000e+30 : f32
    %69 = vector.shape_cast %36 : vector<1x8x8xi1> to vector<1x8x8xi1>
    %70 = vector.broadcast %69 : vector<1x8x8xi1> to vector<2x8x8xi1>
    %71 = vector.broadcast %cst_26 : f32 to vector<2x8x8xf32>
    %72 = arith.select %70, %68, %71 : vector<2x8x8xi1>, vector<2x8x8xf32>
    %cst_27 = arith.constant dense<0xFF800000> : vector<2x8xf32>
    %73 = vector.multi_reduction <maximumf>, %72, %cst_27 [2] : vector<2x8x8xf32> to vector<2x8xf32>
    %74 = vector.shape_cast %73 : vector<2x8xf32> to vector<2x8x1xf32>
    %75 = vector.broadcast %74 : vector<2x8x1xf32> to vector<2x8x8xf32>
    %76 = arith.subf %72, %75 : vector<2x8x8xf32>
    %77 = math.exp %76 : vector<2x8x8xf32>
    %cst_28 = arith.constant dense<0.000000e+00> : vector<2x8xf32>
    %78 = vector.multi_reduction <add>, %77, %cst_28 [2] : vector<2x8x8xf32> to vector<2x8xf32>
    %79 = vector.shape_cast %78 : vector<2x8xf32> to vector<2x8x1xf32>
    %80 = vector.broadcast %79 : vector<2x8x1xf32> to vector<2x8x8xf32>
    %81 = arith.divf %77, %80 : vector<2x8x8xf32>
    "tpu.trace_start"() <{level = 10 : i32, message = "bqk,bkd->bqd"}> : () -> ()
    %cst_29 = arith.constant dense<0.000000e+00> : vector<2x8x8xf32>
    %82 = tpu.matmul %81, %65, %cst_29 {dimension_numbers = #tpu.dot_dimension_numbers<[2], [1], [1], [2], [0, 0, 0, 1, 1, 2], [0], [0]>} : vector<2x8x8xf32>, vector<2x8x8xf32>, vector<2x8x8xf32> -> vector<2x8x8xf32>
    "tpu.trace_stop"() : () -> ()
    %83 = vector.extract_strided_slice %32 {offsets = [0, 16], sizes = [16, 8], strides = [1, 1]} : vector<16x96xf32> to vector<16x8xf32>
    %84 = vector.shape_cast %83 : vector<16x8xf32> to vector<2x8x8xf32>
    %85 = vector.extract_strided_slice %32 {offsets = [0, 48], sizes = [16, 8], strides = [1, 1]} : vector<16x96xf32> to vector<16x8xf32>
    %86 = vector.shape_cast %85 : vector<16x8xf32> to vector<2x8x8xf32>
    %87 = vector.extract_strided_slice %32 {offsets = [0, 80], sizes = [16, 8], strides = [1, 1]} : vector<16x96xf32> to vector<16x8xf32>
    %88 = vector.shape_cast %87 : vector<16x8xf32> to vector<2x8x8xf32>
    "tpu.trace_start"() <{level = 10 : i32, message = "bqd,bkd->bqk"}> : () -> ()
    %cst_30 = arith.constant dense<0.000000e+00> : vector<2x8x8xf32>
    %89 = tpu.matmul %84, %86, %cst_30 {dimension_numbers = #tpu.dot_dimension_numbers<[2], [2], [1], [1], [0, 0, 0, 1, 1, 1], [0], [0]>} : vector<2x8x8xf32>, vector<2x8x8xf32>, vector<2x8x8xf32> -> vector<2x8x8xf32>
    "tpu.trace_stop"() : () -> ()
    %cst_31 = arith.constant 0.353553385 : f32
    %90 = vector.broadcast %cst_31 : f32 to vector<2x8x8xf32>
    %91 = arith.mulf %89, %90 : vector<2x8x8xf32>
    %cst_32 = arith.constant -1.000000e+30 : f32
    %92 = vector.shape_cast %36 : vector<1x8x8xi1> to vector<1x8x8xi1>
    %93 = vector.broadcast %92 : vector<1x8x8xi1> to vector<2x8x8xi1>
    %94 = vector.broadcast %cst_32 : f32 to vector<2x8x8xf32>
    %95 = arith.select %93, %91, %94 : vector<2x8x8xi1>, vector<2x8x8xf32>
    %cst_33 = arith.constant dense<0xFF800000> : vector<2x8xf32>
    %96 = vector.multi_reduction <maximumf>, %95, %cst_33 [2] : vector<2x8x8xf32> to vector<2x8xf32>
    %97 = vector.shape_cast %96 : vector<2x8xf32> to vector<2x8x1xf32>
    %98 = vector.broadcast %97 : vector<2x8x1xf32> to vector<2x8x8xf32>
    %99 = arith.subf %95, %98 : vector<2x8x8xf32>
    %100 = math.exp %99 : vector<2x8x8xf32>
    %cst_34 = arith.constant dense<0.000000e+00> : vector<2x8xf32>
    %101 = vector.multi_reduction <add>, %100, %cst_34 [2] : vector<2x8x8xf32> to vector<2x8xf32>
    %102 = vector.shape_cast %101 : vector<2x8xf32> to vector<2x8x1xf32>
    %103 = vector.broadcast %102 : vector<2x8x1xf32> to vector<2x8x8xf32>
    %104 = arith.divf %100, %103 : vector<2x8x8xf32>
    "tpu.trace_start"() <{level = 10 : i32, message = "bqk,bkd->bqd"}> : () -> ()
    %cst_35 = arith.constant dense<0.000000e+00> : vector<2x8x8xf32>
    %105 = tpu.matmul %104, %88, %cst_35 {dimension_numbers = #tpu.dot_dimension_numbers<[2], [1], [1], [2], [0, 0, 0, 1, 1, 2], [0], [0]>} : vector<2x8x8xf32>, vector<2x8x8xf32>, vector<2x8x8xf32> -> vector<2x8x8xf32>
    "tpu.trace_stop"() : () -> ()
    %106 = vector.extract_strided_slice %32 {offsets = [0, 24], sizes = [16, 8], strides = [1, 1]} : vector<16x96xf32> to vector<16x8xf32>
    %107 = vector.shape_cast %106 : vector<16x8xf32> to vector<2x8x8xf32>
    %108 = vector.extract_strided_slice %32 {offsets = [0, 56], sizes = [16, 8], strides = [1, 1]} : vector<16x96xf32> to vector<16x8xf32>
    %109 = vector.shape_cast %108 : vector<16x8xf32> to vector<2x8x8xf32>
    %110 = vector.extract_strided_slice %32 {offsets = [0, 88], sizes = [16, 8], strides = [1, 1]} : vector<16x96xf32> to vector<16x8xf32>
    %111 = vector.shape_cast %110 : vector<16x8xf32> to vector<2x8x8xf32>
    "tpu.trace_start"() <{level = 10 : i32, message = "bqd,bkd->bqk"}> : () -> ()
    %cst_36 = arith.constant dense<0.000000e+00> : vector<2x8x8xf32>
    %112 = tpu.matmul %107, %109, %cst_36 {dimension_numbers = #tpu.dot_dimension_numbers<[2], [2], [1], [1], [0, 0, 0, 1, 1, 1], [0], [0]>} : vector<2x8x8xf32>, vector<2x8x8xf32>, vector<2x8x8xf32> -> vector<2x8x8xf32>
    "tpu.trace_stop"() : () -> ()
    %cst_37 = arith.constant 0.353553385 : f32
    %113 = vector.broadcast %cst_37 : f32 to vector<2x8x8xf32>
    %114 = arith.mulf %112, %113 : vector<2x8x8xf32>
    %cst_38 = arith.constant -1.000000e+30 : f32
    %115 = vector.shape_cast %36 : vector<1x8x8xi1> to vector<1x8x8xi1>
    %116 = vector.broadcast %115 : vector<1x8x8xi1> to vector<2x8x8xi1>
    %117 = vector.broadcast %cst_38 : f32 to vector<2x8x8xf32>
    %118 = arith.select %116, %114, %117 : vector<2x8x8xi1>, vector<2x8x8xf32>
    %cst_39 = arith.constant dense<0xFF800000> : vector<2x8xf32>
    %119 = vector.multi_reduction <maximumf>, %118, %cst_39 [2] : vector<2x8x8xf32> to vector<2x8xf32>
    %120 = vector.shape_cast %119 : vector<2x8xf32> to vector<2x8x1xf32>
    %121 = vector.broadcast %120 : vector<2x8x1xf32> to vector<2x8x8xf32>
    %122 = arith.subf %118, %121 : vector<2x8x8xf32>
    %123 = math.exp %122 : vector<2x8x8xf32>
    %cst_40 = arith.constant dense<0.000000e+00> : vector<2x8xf32>
    %124 = vector.multi_reduction <add>, %123, %cst_40 [2] : vector<2x8x8xf32> to vector<2x8xf32>
    %125 = vector.shape_cast %124 : vector<2x8xf32> to vector<2x8x1xf32>
    %126 = vector.broadcast %125 : vector<2x8x1xf32> to vector<2x8x8xf32>
    %127 = arith.divf %123, %126 : vector<2x8x8xf32>
    "tpu.trace_start"() <{level = 10 : i32, message = "bqk,bkd->bqd"}> : () -> ()
    %cst_41 = arith.constant dense<0.000000e+00> : vector<2x8x8xf32>
    %128 = tpu.matmul %127, %111, %cst_41 {dimension_numbers = #tpu.dot_dimension_numbers<[2], [1], [1], [2], [0, 0, 0, 1, 1, 2], [0], [0]>} : vector<2x8x8xf32>, vector<2x8x8xf32>, vector<2x8x8xf32> -> vector<2x8x8xf32>
    "tpu.trace_stop"() : () -> ()
    %129 = tpu.concatenate %59, %82, %105, %128 in 2 : vector<2x8x8xf32>, vector<2x8x8xf32>, vector<2x8x8xf32>, vector<2x8x8xf32> -> vector<2x8x32xf32>
    %130 = vector.shape_cast %129 : vector<2x8x32xf32> to vector<16x32xf32>
    %c0_42 = arith.constant 0 : index
    %c0_43 = arith.constant 0 : index
    %131 = vector.load %arg3[%c0_42, %c0_43] : memref<32x32xf32, #tpu.memory_space<vmem>>, vector<32x32xf32>
    %cst_44 = arith.constant dense<0.000000e+00> : vector<16x32xf32>
    %132 = tpu.matmul %130, %131, %cst_44 {dimension_numbers = #tpu.dot_dimension_numbers<[1], [0], [0], [1], [0, 0, 1, 1], [], []>} : vector<16x32xf32>, vector<32x32xf32>, vector<16x32xf32> -> vector<16x32xf32>
    %133 = vector.broadcast %4 : vector<1x32xf32> to vector<16x32xf32>
    %134 = arith.addf %132, %133 : vector<16x32xf32>
    %135 = arith.addf %8, %134 : vector<16x32xf32>
    %cst_45 = arith.constant dense<0.000000e+00> : vector<16xf32>
    %136 = vector.multi_reduction <add>, %135, %cst_45 [1] : vector<16x32xf32> to vector<16xf32>
    %137 = vector.shape_cast %136 : vector<16xf32> to vector<16x1xf32>
    %cst_46 = arith.constant 3.200000e+01 : f32
    %138 = vector.broadcast %cst_46 : f32 to vector<16x1xf32>
    %139 = arith.divf %137, %138 : vector<16x1xf32>
    %140 = vector.broadcast %139 : vector<16x1xf32> to vector<16x32xf32>
    %141 = arith.subf %135, %140 : vector<16x32xf32>
    %142 = arith.mulf %141, %141 : vector<16x32xf32>
    %cst_47 = arith.constant dense<0.000000e+00> : vector<16xf32>
    %143 = vector.multi_reduction <add>, %142, %cst_47 [1] : vector<16x32xf32> to vector<16xf32>
    %144 = vector.shape_cast %143 : vector<16xf32> to vector<16x1xf32>
    %cst_48 = arith.constant 3.200000e+01 : f32
    %145 = vector.broadcast %cst_48 : f32 to vector<16x1xf32>
    %146 = arith.divf %144, %145 : vector<16x1xf32>
    %147 = vector.broadcast %139 : vector<16x1xf32> to vector<16x32xf32>
    %148 = arith.subf %135, %147 : vector<16x32xf32>
    %cst_49 = arith.constant 9.99999974E-6 : f32
    %149 = vector.broadcast %cst_49 : f32 to vector<16x1xf32>
    %150 = arith.addf %146, %149 : vector<16x1xf32>
    %151 = math.rsqrt %150 : vector<16x1xf32>
    %152 = vector.broadcast %151 : vector<16x1xf32> to vector<16x32xf32>
    %153 = arith.mulf %148, %152 : vector<16x32xf32>
    %154 = vector.broadcast %2 : vector<1x32xf32> to vector<16x32xf32>
    %155 = arith.mulf %153, %154 : vector<16x32xf32>
    %156 = vector.broadcast %3 : vector<1x32xf32> to vector<16x32xf32>
    %157 = arith.addf %155, %156 : vector<16x32xf32>
    %c0_50 = arith.constant 0 : index
    %c0_51 = arith.constant 0 : index
    %158 = vector.load %arg4[%c0_50, %c0_51] : memref<32x128xf32, #tpu.memory_space<vmem>>, vector<32x128xf32>
    %cst_52 = arith.constant dense<0.000000e+00> : vector<16x128xf32>
    %159 = tpu.matmul %157, %158, %cst_52 {dimension_numbers = #tpu.dot_dimension_numbers<[1], [0], [0], [1], [0, 0, 1, 1], [], []>} : vector<16x32xf32>, vector<32x128xf32>, vector<16x128xf32> -> vector<16x128xf32>
    %160 = vector.broadcast %6 : vector<1x128xf32> to vector<16x128xf32>
    %161 = arith.addf %159, %160 : vector<16x128xf32>
    %cst_53 = arith.constant 0.000000e+00 : f32
    %162 = vector.broadcast %cst_53 : f32 to vector<16x128xf32>
    %163 = arith.maximumf %161, %162 : vector<16x128xf32>
    %c0_54 = arith.constant 0 : index
    %c0_55 = arith.constant 0 : index
    %164 = vector.load %arg5[%c0_54, %c0_55] : memref<128x32xf32, #tpu.memory_space<vmem>>, vector<128x32xf32>
    %cst_56 = arith.constant dense<0.000000e+00> : vector<16x32xf32>
    %165 = tpu.matmul %163, %164, %cst_56 {dimension_numbers = #tpu.dot_dimension_numbers<[1], [0], [0], [1], [0, 0, 1, 1], [], []>} : vector<16x128xf32>, vector<128x32xf32>, vector<16x32xf32> -> vector<16x32xf32>
    %166 = vector.broadcast %5 : vector<1x32xf32> to vector<16x32xf32>
    %167 = arith.addf %165, %166 : vector<16x32xf32>
    %168 = arith.addf %135, %167 : vector<16x32xf32>
    %169 = vector.shape_cast %168 : vector<16x32xf32> to vector<2x8x32xf32>
    %c0_57 = arith.constant 0 : index
    %c0_58 = arith.constant 0 : index
    %c0_59 = arith.constant 0 : index
    %170 = vector.load %arg7[%c0_57, %c0_58, %c0_59] : memref<2x8x32xf32, #tpu.memory_space<vmem>>, vector<2x8x32xf32>
    tpu.vector_store %arg7[%c0_57, %c0_58, %c0_59], %169 {strides = array<i32>} : memref<2x8x32xf32, #tpu.memory_space<vmem>>, vector<2x8x32xf32>,
    return
  }
  func.func @transform_0(%arg0: i32) -> (i32, i32, i32) {
    %c0_i32 = arith.constant 0 : i32
    %c0_i32_0 = arith.constant 0 : i32
    %c0_i32_1 = arith.constant 0 : i32
    return %arg0, %c0_i32, %c0_i32_0 : i32, i32, i32
  }
  func.func @transform_1(%arg0: i32) -> (i32, i32) {
    %c0_i32 = arith.constant 0 : i32
    %c0_i32_0 = arith.constant 0 : i32
    %c0_i32_1 = arith.constant 0 : i32
    return %c0_i32, %c0_i32_0 : i32, i32
  }
  func.func @transform_2(%arg0: i32) -> (i32, i32) {
    %c0_i32 = arith.constant 0 : i32
    %c0_i32_0 = arith.constant 0 : i32
    %c0_i32_1 = arith.constant 0 : i32
    return %c0_i32, %c0_i32_0 : i32, i32
  }
  func.func @transform_3(%arg0: i32) -> (i32, i32) {
    %c0_i32 = arith.constant 0 : i32
    %c0_i32_0 = arith.constant 0 : i32
    %c0_i32_1 = arith.constant 0 : i32
    return %c0_i32, %c0_i32_0 : i32, i32
  }
  func.func @transform_4(%arg0: i32) -> (i32, i32) {
    %c0_i32 = arith.constant 0 : i32
    %c0_i32_0 = arith.constant 0 : i32
    %c0_i32_1 = arith.constant 0 : i32
    return %c0_i32, %c0_i32_0 : i32, i32
  }
  func.func @transform_5(%arg0: i32) -> (i32, i32) {
    %c0_i32 = arith.constant 0 : i32
    %c0_i32_0 = arith.constant 0 : i32
    %c0_i32_1 = arith.constant 0 : i32
    return %c0_i32, %c0_i32_0 : i32, i32
  }
  func.func @transform_6(%arg0: i32) -> (i32, i32, i32) {
    %c0_i32 = arith.constant 0 : i32
    %c0_i32_0 = arith.constant 0 : i32
    %c0_i32_1 = arith.constant 0 : i32
    return %arg0, %c0_i32, %c0_i32_0 : i32, i32, i32
  }
}

</mosaic_0001>

<bundles_post_ra>
// kernel: tpu_custom_call.1
= control target key start
LH: loop header
LB: loop body
LE: loop exit
PB: predicated region body
PF: predicated region fallthrough
CT: control target
= control target key end

     0   :  { %vm29_vm0 = vcmask 261120   ;;  %s2627_s0 = inlined_call_operand.vmem [shape: f32[2,8,32], index: 0, kind: input, shape index: {}]   ;;  %s2628_s1 = inlined_call_operand.vmem [shape: f32[32,96], index: 1, kind: input, shape index: {}]   ;;  %s2629_s2 = inlined_call_operand.vmem [shape: f32[32,32], index: 2, kind: input, shape index: {}]   ;;  %s2630_s3 = inlined_call_operand.vmem [shape: f32[32,128], index: 3, kind: input, shape index: {}]   ;;  %s2631_s4 = inlined_call_operand.vmem [shape: f32[128,32], index: 4, kind: input, shape index: {}]   ;;  %s2632_s5 = inlined_call_operand.vmem [shape: f32[8,128], index: 5, kind: input, shape index: {}]   ;;  %s2633_s6 = inlined_call_operand.hbm [shape: f32[2,8,32], index: 6, kind: output, shape index: {}]  }
   0x1   :  { %v2306_v0 = vld [vmem:[%s2627_s0] sm:$0xff]  ;;  %v2311_v1 = vld [vmem:[%s2627_s0 + $0x8] sm:$0xff] }
   0x2   :  { %11 = vsyncpa [#allocation3], 0  ;;  %v30_v2 = vsel %vm29_vm0, %v2306_v0, 0.0  ;;  %v33_v3 = vsel %vm29_vm0, %v2311_v1, 0.0  ;;  %v2320_v4 = vld [vmem:[%s2632_s5] ss:$0 sm:$0xff]  ;;  %v154_v41 = vlaneseq }
   0x3   :  { %31 = vadd.xlane.f32.xlu0 %v30_v2  ;;  %s2249_s27 = smov 96   ;;  %v69_v15 = vld [vmem:[%s2628_s1] sm:$0xff]  ;;  %v70_v16 = vld [vmem:[%s2628_s1 + $0x8] sm:$0xff]  ;;  %v71_v18 = vld [vmem:[%s2628_s1 + $0x10] sm:$0xff]  ;;  %v2250_v36 = vmov 0.0   ;;  %vm2251_vm1 = vmmov 0  }
   0x4   :  { %v2110_v17 = vpack.c.bf16 %v70_v16, %v69_v15  ;;  %v72_v19 = vld [vmem:[%s2628_s1 + $0x18] sm:$0xff]  ;;  %1983 = vmatprep.subr.mxu0 %v2250_v36  ;;  %1985 = vmatprep.mubr.msk.f32.mxu0 %vm2251_vm1, %v2250_v36  ;;  %vm162_vm2 = vcmask 64512   ;;  %v155_v42 = vshrl.u32 %v154_v41, 7  ;;  %v157_v43 = vand.u32 127, %v154_v41  ;;  %s2252_s1 = smov 64   ;;  %s2253_s11 = smov 88  }
   0x5   :  { %v2114_v20 = vpack.c.bf16 %v72_v19, %v71_v18  ;;  %s2254_s12 = smov 120   ;;  %s2255_s13 = smov 56   ;;  %vm1522_vm4 = vcmask 130048   ;;  %vm1525_vm5 = vcmask 195584  }
   0x6   :  { %2111 = vmatprep.subr.bf16.mxu1 %v2110_v17  ;;  %vm2370_vm3 = vcmp.ge.s32.totalorder %v155_v42, %v157_v43  ;;  %s2256_s14 = smov 80   ;;  %s2257_s15 = smov 112  }
   0x7   :  { %34 = vadd.xlane.f32.xlu0 %v33_v3  ;;  %2113 = vmatpush3.bf16.msra.mxu1 %v2110_v17  ;;  %s2258_s16 = smov 48   ;;  %s2259_s17 = smov 72  }
   0x8   :  { %2115 = vmatprep.subr.bf16.mxu1 %v2114_v20  ;;  %s2260_s18 = smov 104   ;;  %s2261_s19 = smov 40  }
   0x9   :  { %s2262_s20 = smov 8   ;;  %s2263_s21 = smov 16  }
   0xa   :  { %s2264_s30 = smov 24  }
   0xb   :  { %2117 = vmatpush3.bf16.msra.mxu1 %v2114_v20 }
   0xc   :  { %1973 = vmatprep.subr.mxu1 %v2250_v36 }
  0x1d   :  { %64 = vrot.lane.b32.xlu0 %v2320_v4, %s2249_s27 }
  0x90   :  { %v32_v5 = vpop.xlane.xlu0 %31 }
  0x91   :  { %v37_v6 = vmul.f32 0.03125, %v32_v5 }
  0x93   :  { %v39_v7 = vsub.f32 %v2306_v0, %v37_v6 }
  0x94   :  { %v35_v8 = vpop.xlane.xlu0 %34 }
  0x95   :  { %v38_v9 = vmul.f32 0.03125, %v35_v8  ;;  %v41_v10 = vmul.f32 %v39_v7, %v39_v7 }
  0x97   :  { %v40_v11 = vsub.f32 %v2311_v1, %v38_v9  ;;  %v43_v12 = vsel %vm29_vm0, %v41_v10, 0.0 }
  0x98   :  { %44 = vadd.xlane.f32.xlu1 %v43_v12  ;;  %v65_v29 = vpop.permute.xlu0 %64 }
  0x99   :  { %v42_v13 = vmul.f32 %v40_v11, %v40_v11 }
  0x9b   :  { %v46_v14 = vsel %vm29_vm0, %v42_v13, 0.0 }
  0x9c   :  { %47 = vadd.xlane.f32.xlu1 %v46_v14 }
 0x125   :  { %v45_v21 = vpop.xlane.xlu1 %44 }
 0x126   :  { %v49_v22 = vmul.f32 0.03125, %v45_v21 }
 0x128   :  { %v51_v23 = vadd.f32 1e-05, %v49_v22 }
 0x129   :  { %v48_v24 = vpop.xlane.xlu1 %47 }
 0x12a   :  { %2185 = vrsqrt.f32 %v51_v23  ;;  %v50_v25 = vmul.f32 0.03125, %v48_v24 }
 0x12c   :  { %v52_v26 = vadd.f32 1e-05, %v50_v25 }
 0x12e   :  { %2187 = vrsqrt.f32 %v52_v26 }
 0x134   :  { %v2186_v27 = vpop.eup %2185 }
 0x135   :  { %v55_v28 = vmul.f32 %v2186_v27, %v39_v7 }
 0x137   :  { %v61_v30 = vmul.f32 %v2320_v4, %v55_v28 }
 0x138   :  { %v2188_v31 = vpop.eup %2187 }
 0x139   :  { %v56_v32 = vmul.f32 %v2188_v31, %v40_v11  ;;  %v67_v33 = vadd.f32 %v65_v29, %v61_v30 }
 0x13b   :  { %v62_v34 = vmul.f32 %v2320_v4, %v56_v32  ;;  %1970 = vmatprep.mubr.msk.f32.mxu1 %vm29_vm0, %v67_v33 }
 0x13d   :  { %v68_v35 = vadd.f32 %v65_v29, %v62_v34 }
 0x13f   :  { %1971 = vmatmul.mubr.msk.f32.vlgmr.msra.gmra.mrb[0].mxu1 %vm29_vm0, %v68_v35 }
 0x140   :  { %1975 = vmatprep.mubr.msk.f32.mxu1 %vm2251_vm1, %v2250_v36 }
 0x212   :  { %v2350_v37 = vpop.f32.mrb[0].mxu1 }
 0x213   :  { %v2352_v38 = vpop.f32.mrb[1].mxu1 }
 0x214   :  { %160 = vrot.lane.b32.xlu1 %v2352_v38, %s2249_s27 }
 0x218   :  { %238 = vrot.lane.b32.xlu1 %v2350_v37, %s2249_s27 }
 0x286   :  { %v161_v39 = vpop.permute.xlu1 %160 }
 0x287   :  { %1974 = vmatpush3.xpose.msk.msra.mxu1 %vm162_vm2, %v161_v39 }
 0x288   :  { %1978 = vmatprep.subr.mxu1 %v2250_v36 }
 0x28a   :  { %1976 = vmatmul.mubr.msk.f32.vlgmr.msra.gmra.mrb[2].mxu1 %vm162_vm2, %v2352_v38  ;;  %v239_v40 = vpop.permute.xlu1 %238 }
 0x28b   :  { %1979 = vmatpush3.xpose.msk.msra.mxu1 %vm162_vm2, %v239_v40  ;;  %1980 = vmatprep.mubr.msk.f32.mxu1 %vm2251_vm1, %v2250_v36 }
 0x28c   :  { %1988 = vmatprep.subr.mxu1 %v2250_v36 }
 0x28e   :  { %1981 = vmatmul.mubr.msk.f32.vlgmr.msra.gmra.mrb[4].mxu1 %vm162_vm2, %v2350_v37 }
 0x28f   :  { %1990 = vmatprep.mubr.msk.f32.mxu1 %vm2251_vm1, %v2250_v36 }
 0x35d   :  { %v233_v44 = vpop.f32.mrb[2].mxu1 }
 0x35e   :  { %v314_v46 = vmul.f32 0.35355338, %v233_v44  ;;  %v1977_v47 = vpop.f32.mrb[3].mxu1 }
 0x360   :  { %v318_v48 = vsel %vm2370_vm3, %v314_v46, -1e+30 }
 0x361   :  { %v310_v49 = vpop.f32.mrb[4].mxu1  ;;  %v320_v50 = vsel %vm162_vm2, %v318_v48, -inf }
 0x362   :  { %v315_v51 = vmul.f32 0.35355338, %v310_v49  ;;  %321 = vmax.xlane.f32.xlu1 %v320_v50  ;;  %v1982_v52 = vpop.f32.mrb[5].mxu1 }
 0x364   :  { %v319_v53 = vsel %vm2370_vm3, %v315_v51, -1e+30 }
 0x365   :  { %v323_v54 = vsel %vm162_vm2, %v319_v53, -inf }
 0x366   :  { %324 = vmax.xlane.f32.xlu0 %v323_v54 }
 0x373   :  { %342 = vrot.lane.b32.xlu1 %v2352_v38, %s2252_s1 }
 0x377   :  { %496 = vrot.lane.b32.xlu1 %v2352_v38, %s2253_s11 }
 0x37b   :  { %574 = vrot.lane.b32.xlu1 %v2350_v37, %s2253_s11 }
 0x37c   :  { %418 = vrot.lane.b32.xlu0 %v2350_v37, %s2252_s1 }
 0x37f   :  { %494 = vrot.lane.b32.xlu1 %v2352_v38, %s2254_s12 }
 0x3ef   :  { %v322_v55 = vpop.xlane.xlu1 %321 }
 0x3f0   :  { %v326_v56 = vsub.f32 %v318_v48, %v322_v55 }
 0x3f2   :  { %v328_v57 = vmul.f32 1.442695, %v326_v56 }
 0x3f3   :  { %v325_v58 = vpop.xlane.xlu0 %324  ;;  %v343_v59 = vpop.permute.xlu1 %342 }
 0x3f4   :  { %2189 = vpow2.f32 %v328_v57  ;;  %v327_v60 = vsub.f32 %v319_v53, %v325_v58  ;;  %1984 = vmatpush3.msra.mxu0 %v343_v59 }
 0x3f5   :  { %1993 = vmatprep.subr.mxu0 %v2250_v36 }
 0x3f6   :  { %v330_v61 = vmul.f32 1.442695, %v327_v60 }
 0x3f7   :  { %v419_v62 = vpop.permute.xlu0 %418  ;;  %v497_v8 = vpop.permute.xlu1 %496 }
 0x3f8   :  { %2191 = vpow2.f32 %v330_v61  ;;  %1989 = vmatpush3.msra.mxu1 %v419_v62 }
 0x3f9   :  { %1998 = vmatprep.subr.mxu1 %v2250_v36 }
 0x3fb   :  { %v575_v10 = vpop.permute.xlu1 %574 }
 0x3fe   :  { %v2190_v63 = vpop.eup %2189 }
 0x3ff   :  { %v332_v2 = vsel %vm162_vm2, %v2190_v63, 0.0  ;;  %v495_v14 = vpop.permute.xlu1 %494 }
 0x400   :  { %333 = vadd.xlane.f32.xlu0 %v332_v2 }
 0x402   :  { %v2192_v3 = vpop.eup %2191 }
 0x403   :  { %v335_v5 = vsel %vm162_vm2, %v2192_v3, 0.0 }
 0x404   :  { %336 = vadd.xlane.f32.xlu0 %v335_v5 }
 0x41a   :  { %572 = vrot.lane.b32.xlu0 %v2350_v37, %s2254_s12 }
 0x48d   :  { %v334_v6 = vpop.xlane.xlu0 %333 }
 0x48e   :  { %2193 = vrcp.f32 %v334_v6 }
 0x491   :  { %v337_v7 = vpop.xlane.xlu0 %336 }
 0x492   :  { %2195 = vrcp.f32 %v337_v7 }
 0x495   :  { %v573_v15 = vpop.permute.xlu0 %572 }
 0x498   :  { %v2194_v9 = vpop.eup %2193 }
 0x499   :  { %v339_v11 = vmul.f32 %v2194_v9, %v2190_v63 }
 0x49b   :  { %1986 = vmatmul.mubr.msk.f32.vlgmr.msra.gmra.mrb[0].mxu0 %vm162_vm2, %v339_v11 }
 0x49c   :  { %v2196_v12 = vpop.eup %2195  ;;  %1994 = vmatpush3.xpose.msk.msra.mxu0 %vm162_vm2, %v497_v8  ;;  %1995 = vmatprep.mubr.msk.f32.mxu0 %vm2251_vm1, %v2250_v36 }
 0x49d   :  { %v341_v13 = vmul.f32 %v2196_v12, %v2192_v3  ;;  %2003 = vmatprep.subr.mxu0 %v2250_v36 }
 0x49f   :  { %1991 = vmatmul.mubr.msk.f32.vlgmr.msra.gmra.mrb[6].mxu1 %vm162_vm2, %v341_v13  ;;  %1996 = vmatmul.mubr.msk.f32.vlgmr.msra.gmra.mrb[2].mxu0 %vm162_vm2, %v495_v14 }
 0x4a0   :  { %1999 = vmatpush3.xpose.msk.msra.mxu1 %vm162_vm2, %v575_v10  ;;  %2000 = vmatprep.mubr.msk.f32.mxu1 %vm2251_vm1, %v2250_v36 }
 0x4a1   :  { %2008 = vmatprep.subr.mxu1 %v2250_v36  ;;  %2005 = vmatprep.mubr.msk.f32.mxu0 %vm2251_vm1, %v2250_v36 }
 0x4a3   :  { %2001 = vmatmul.mubr.msk.f32.vlgmr.msra.gmra.mrb[8].mxu1 %vm162_vm2, %v573_v15 }
 0x4a4   :  { %2010 = vmatprep.mubr.msk.f32.mxu1 %vm2251_vm1, %v2250_v36 }
 0x56e   :  { %v2408_v16 = vpop.f32.mrb[0].mxu0 }
 0x56f   :  { %v1987_v17 = vpop.f32.mrb[1].mxu0 }
 0x572   :  { %v2410_v18 = vpop.f32.mrb[6].mxu1  ;;  %v568_v19 = vpop.f32.mrb[2].mxu0 }
 0x573   :  { %v650_v20 = vmul.f32 0.35355338, %v568_v19  ;;  %v1992_v21 = vpop.f32.mrb[7].mxu1  ;;  %v1997_v22 = vpop.f32.mrb[3].mxu0 }
 0x575   :  { %v652_v23 = vsel %vm2370_vm3, %v650_v20, -1e+30 }
 0x576   :  { %v646_v24 = vpop.f32.mrb[8].mxu1  ;;  %v654_v25 = vsel %vm162_vm2, %v652_v23, -inf }
 0x577   :  { %v651_v26 = vmul.f32 0.35355338, %v646_v24  ;;  %v2002_v27 = vpop.f32.mrb[9].mxu1  ;;  %655 = vmax.xlane.f32.xlu1 %v654_v25 }
 0x579   :  { %v653_v28 = vsel %vm2370_vm3, %v651_v26, -1e+30 }
 0x57a   :  { %v657_v29 = vsel %vm162_vm2, %v653_v28, -inf }
 0x57b   :  { %658 = vmax.xlane.f32.xlu0 %v657_v29 }
 0x588   :  { %676 = vrot.lane.b32.xlu1 %v2352_v38, %s2255_s13 }
 0x58c   :  { %830 = vrot.lane.b32.xlu1 %v2352_v38, %s2256_s14 }
 0x590   :  { %908 = vrot.lane.b32.xlu1 %v2350_v37, %s2256_s14 }
 0x591   :  { %752 = vrot.lane.b32.xlu0 %v2350_v37, %s2255_s13 }
 0x594   :  { %828 = vrot.lane.b32.xlu1 %v2352_v38, %s2257_s15 }
 0x604   :  { %v656_v30 = vpop.xlane.xlu1 %655 }
 0x605   :  { %v660_v31 = vsub.f32 %v652_v23, %v656_v30 }
 0x607   :  { %v662_v32 = vmul.f32 1.442695, %v660_v31 }
 0x608   :  { %v659_v33 = vpop.xlane.xlu0 %658  ;;  %v677_v34 = vpop.permute.xlu1 %676 }
 0x609   :  { %2197 = vpow2.f32 %v662_v32  ;;  %v661_v35 = vsub.f32 %v653_v28, %v659_v33  ;;  %2004 = vmatpush3.msra.mxu0 %v677_v34 }
 0x60a   :  { %2013 = vmatprep.subr.mxu0 %v2250_v36 }
 0x60b   :  { %v664_v39 = vmul.f32 1.442695, %v661_v35 }
 0x60c   :  { %v753_v40 = vpop.permute.xlu0 %752  ;;  %v831_v48 = vpop.permute.xlu1 %830 }
 0x60d   :  { %2199 = vpow2.f32 %v664_v39  ;;  %2009 = vmatpush3.msra.mxu1 %v753_v40 }
 0x60e   :  { %2018 = vmatprep.subr.mxu1 %v2250_v36 }
 0x610   :  { %v909_v50 = vpop.permute.xlu1 %908 }
 0x613   :  { %v2198_v41 = vpop.eup %2197 }
 0x614   :  { %v666_v42 = vsel %vm162_vm2, %v2198_v41, 0.0  ;;  %v829_v54 = vpop.permute.xlu1 %828 }
 0x615   :  { %667 = vadd.xlane.f32.xlu0 %v666_v42 }
 0x617   :  { %v2200_v43 = vpop.eup %2199 }
 0x618   :  { %v669_v44 = vsel %vm162_vm2, %v2200_v43, 0.0 }
 0x619   :  { %670 = vadd.xlane.f32.xlu0 %v669_v44 }
 0x62f   :  { %906 = vrot.lane.b32.xlu0 %v2350_v37, %s2257_s15 }
 0x6a2   :  { %v668_v46 = vpop.xlane.xlu0 %667 }
 0x6a3   :  { %2201 = vrcp.f32 %v668_v46 }
 0x6a6   :  { %v671_v47 = vpop.xlane.xlu0 %670 }
 0x6a7   :  { %2203 = vrcp.f32 %v671_v47 }
 0x6aa   :  { %v907_v55 = vpop.permute.xlu0 %906 }
 0x6ad   :  { %v2202_v49 = vpop.eup %2201 }
 0x6ae   :  { %v673_v51 = vmul.f32 %v2202_v49, %v2198_v41 }
 0x6b0   :  { %2006 = vmatmul.mubr.msk.f32.vlgmr.msra.gmra.mrb[4].mxu0 %vm162_vm2, %v673_v51 }
 0x6b1   :  { %v2204_v52 = vpop.eup %2203  ;;  %2014 = vmatpush3.xpose.msk.msra.mxu0 %vm162_vm2, %v831_v48  ;;  %2015 = vmatprep.mubr.msk.f32.mxu0 %vm2251_vm1, %v2250_v36 }
 0x6b2   :  { %v675_v53 = vmul.f32 %v2204_v52, %v2200_v43  ;;  %2023 = vmatprep.subr.mxu0 %v2250_v36 }
 0x6b4   :  { %2011 = vmatmul.mubr.msk.f32.vlgmr.msra.gmra.mrb[10].mxu1 %vm162_vm2, %v675_v53  ;;  %2016 = vmatmul.mubr.msk.f32.vlgmr.msra.gmra.mrb[6].mxu0 %vm162_vm2, %v829_v54 }
 0x6b5   :  { %2019 = vmatpush3.xpose.msk.msra.mxu1 %vm162_vm2, %v909_v50  ;;  %2020 = vmatprep.mubr.msk.f32.mxu1 %vm2251_vm1, %v2250_v36 }
 0x6b6   :  { %2028 = vmatprep.subr.mxu1 %v2250_v36  ;;  %2025 = vmatprep.mubr.msk.f32.mxu0 %vm2251_vm1, %v2250_v36 }
 0x6b8   :  { %2021 = vmatmul.mubr.msk.f32.vlgmr.msra.gmra.mrb[12].mxu1 %vm162_vm2, %v907_v55 }
 0x6b9   :  { %2030 = vmatprep.mubr.msk.f32.mxu1 %vm2251_vm1, %v2250_v36 }
 0x783   :  { %v2444_v56 = vpop.f32.mrb[4].mxu0 }
 0x784   :  { %v2007_v57 = vpop.f32.mrb[5].mxu0 }
 0x787   :  { %v2446_v58 = vpop.f32.mrb[10].mxu1  ;;  %v902_v59 = vpop.f32.mrb[6].mxu0 }
 0x788   :  { %v984_v60 = vmul.f32 0.35355338, %v902_v59  ;;  %v2012_v61 = vpop.f32.mrb[11].mxu1  ;;  %v2017_v62 = vpop.f32.mrb[7].mxu0 }
 0x78a   :  { %v986_v63 = vsel %vm2370_vm3, %v984_v60, -1e+30 }
 0x78b   :  { %v980_v2 = vpop.f32.mrb[12].mxu1  ;;  %v988_v3 = vsel %vm162_vm2, %v986_v63, -inf }
 0x78c   :  { %v985_v5 = vmul.f32 0.35355338, %v980_v2  ;;  %v2022_v6 = vpop.f32.mrb[13].mxu1  ;;  %989 = vmax.xlane.f32.xlu1 %v988_v3 }
 0x78e   :  { %v987_v7 = vsel %vm2370_vm3, %v985_v5, -1e+30  ;;  %v1528_v5 = vld [vmem:[%s2629_s2] sm:$0xff] }
 0x78f   :  { %v991_v8 = vsel %vm162_vm2, %v987_v7, -inf }
 0x790   :  { %992 = vmax.xlane.f32.xlu0 %v991_v8  ;;  %v1531_v8 = vld [vmem:[%s2629_s2 + $0x18] sm:$0xff] }
 0x79d   :  { %1010 = vrot.lane.b32.xlu1 %v2352_v38, %s2258_s16 }
 0x7a1   :  { %1164 = vrot.lane.b32.xlu1 %v2352_v38, %s2259_s17 }
 0x7a5   :  { %1242 = vrot.lane.b32.xlu1 %v2350_v37, %s2259_s17 }
 0x7a6   :  { %1086 = vrot.lane.b32.xlu0 %v2350_v37, %s2258_s16 }
 0x7a9   :  { %1162 = vrot.lane.b32.xlu1 %v2352_v38, %s2260_s18 }
 0x819   :  { %v990_v9 = vpop.xlane.xlu1 %989 }
 0x81a   :  { %v994_v10 = vsub.f32 %v986_v63, %v990_v9 }
 0x81c   :  { %v996_v11 = vmul.f32 1.442695, %v994_v10 }
 0x81d   :  { %v993_v12 = vpop.xlane.xlu0 %992  ;;  %v1011_v13 = vpop.permute.xlu1 %1010 }
 0x81e   :  { %2205 = vpow2.f32 %v996_v11  ;;  %v995_v14 = vsub.f32 %v987_v7, %v993_v12  ;;  %2024 = vmatpush3.msra.mxu0 %v1011_v13  ;;  %v1530_v7 = vld [vmem:[%s2629_s2 + $0x10] sm:$0xff] }
 0x81f   :  { %2033 = vmatprep.subr.mxu0 %v2250_v36  ;;  %v2122_v9 = vpack.c.bf16 %v1531_v8, %v1530_v7 }
 0x820   :  { %v998_v15 = vmul.f32 1.442695, %v995_v14 }
 0x821   :  { %v1087_v17 = vpop.permute.xlu0 %1086  ;;  %v1165_v25 = vpop.permute.xlu1 %1164 }
 0x822   :  { %2207 = vpow2.f32 %v998_v15  ;;  %2029 = vmatpush3.msra.mxu1 %v1087_v17 }
 0x823   :  { %2038 = vmatprep.subr.mxu1 %v2250_v36 }
 0x825   :  { %v1243_v27 = vpop.permute.xlu1 %1242 }
 0x828   :  { %v2206_v19 = vpop.eup %2205 }
 0x829   :  { %v1000_v20 = vsel %vm162_vm2, %v2206_v19, 0.0  ;;  %v1163_v31 = vpop.permute.xlu1 %1162 }
 0x82a   :  { %1001 = vadd.xlane.f32.xlu0 %v1000_v20 }
 0x82c   :  { %v2208_v21 = vpop.eup %2207 }
 0x82d   :  { %v1003_v22 = vsel %vm162_vm2, %v2208_v21, 0.0 }
 0x82e   :  { %1004 = vadd.xlane.f32.xlu0 %v1003_v22 }
 0x844   :  { %1240 = vrot.lane.b32.xlu0 %v2350_v37, %s2260_s18 }
 0x8b7   :  { %v1002_v23 = vpop.xlane.xlu0 %1001 }
 0x8b8   :  { %2209 = vrcp.f32 %v1002_v23 }
 0x8bb   :  { %v1005_v24 = vpop.xlane.xlu0 %1004 }
 0x8bc   :  { %2211 = vrcp.f32 %v1005_v24 }
 0x8bf   :  { %v1241_v32 = vpop.permute.xlu0 %1240 }
 0x8c2   :  { %v2210_v26 = vpop.eup %2209 }
 0x8c3   :  { %v1007_v28 = vmul.f32 %v2210_v26, %v2206_v19 }
 0x8c5   :  { %2026 = vmatmul.mubr.msk.f32.vlgmr.msra.gmra.mrb[8].mxu0 %vm162_vm2, %v1007_v28  ;;  %v1888_v28 = vld [vmem:[%s2632_s5 + $0x1] ss:$0 sm:$0xff] }
 0x8c6   :  { %v2212_v29 = vpop.eup %2211  ;;  %2034 = vmatpush3.xpose.msk.msra.mxu0 %vm162_vm2, %v1165_v25  ;;  %2035 = vmatprep.mubr.msk.f32.mxu0 %vm2251_vm1, %v2250_v36 }
 0x8c7   :  { %v1009_v30 = vmul.f32 %v2212_v29, %v2208_v21  ;;  %2043 = vmatprep.subr.mxu0 %v2250_v36 }
 0x8c9   :  { %2031 = vmatmul.mubr.msk.f32.vlgmr.msra.gmra.mrb[14].mxu1 %vm162_vm2, %v1009_v30  ;;  %2036 = vmatmul.mubr.msk.f32.vlgmr.msra.gmra.mrb[10].mxu0 %vm162_vm2, %v1163_v31 }
 0x8ca   :  { %2039 = vmatpush3.xpose.msk.msra.mxu1 %vm162_vm2, %v1243_v27  ;;  %2040 = vmatprep.mubr.msk.f32.mxu1 %vm2251_vm1, %v2250_v36 }
 0x8cb   :  { %2048 = vmatprep.subr.mxu1 %v2250_v36  ;;  %2045 = vmatprep.mubr.msk.f32.mxu0 %vm2251_vm1, %v2250_v36 }
 0x8cd   :  { %2041 = vmatmul.mubr.msk.f32.vlgmr.msra.gmra.mrb[16].mxu1 %vm162_vm2, %v1241_v32 }
 0x8ce   :  { %2050 = vmatprep.mubr.msk.f32.mxu1 %vm2251_vm1, %v2250_v36 }
 0x998   :  { %v1082_v33 = vpop.f32.mrb[8].mxu0 }
 0x999   :  { %v2027_v34 = vpop.f32.mrb[9].mxu0 }
 0x99c   :  { %v1158_v35 = vpop.f32.mrb[14].mxu1  ;;  %v1236_v39 = vpop.f32.mrb[10].mxu0 }
 0x99d   :  { %v1318_v40 = vmul.f32 0.35355338, %v1236_v39  ;;  %v2032_v41 = vpop.f32.mrb[15].mxu1  ;;  %v2037_v42 = vpop.f32.mrb[11].mxu0 }
 0x99f   :  { %v1320_v43 = vsel %vm2370_vm3, %v1318_v40, -1e+30 }
 0x9a0   :  { %v1314_v44 = vpop.f32.mrb[16].mxu1  ;;  %v1322_v46 = vsel %vm162_vm2, %v1320_v43, -inf }
 0x9a1   :  { %v1319_v47 = vmul.f32 0.35355338, %v1314_v44  ;;  %v2042_v48 = vpop.f32.mrb[17].mxu1  ;;  %1323 = vmax.xlane.f32.xlu1 %v1322_v46 }
 0x9a2   :  { %v1656_v48 = vld [vmem:[%s2630_s3 + $0x8] sm:$0xff] }
 0x9a3   :  { %v1321_v49 = vsel %vm2370_vm3, %v1319_v47, -1e+30  ;;  %v1655_v47 = vld [vmem:[%s2630_s3] sm:$0xff] }
 0x9a4   :  { %v1325_v36 = vsel %vm162_vm2, %v1321_v49, -inf }
 0x9a5   :  { %1326 = vmax.xlane.f32.xlu0 %v1325_v36  ;;  %v1657_v36 = vld [vmem:[%s2630_s3 + $0x10] sm:$0xff] }
 0x9b2   :  { %1344 = vrot.lane.b32.xlu1 %v2352_v38, %s2261_s19 }
 0x9b6   :  { %1498 = vrot.lane.b32.xlu1 %v2444_v56, %s2262_s20 }
 0x9ba   :  { %1500 = vrot.lane.b32.xlu1 %v2446_v58, %s2262_s20 }
 0x9be   :  { %1506 = vrot.lane.b32.xlu1 %v1082_v33, %s2263_s21 }
 0xa2e   :  { %v1324_v50 = vpop.xlane.xlu1 %1323 }
 0xa2f   :  { %v1328_v51 = vsub.f32 %v1320_v43, %v1324_v50  ;;  %v1658_v50 = vld [vmem:[%s2630_s3 + $0x18] sm:$0xff] }
 0xa31   :  { %v1330_v52 = vmul.f32 1.442695, %v1328_v51  ;;  %v1746_v51 = vld [vmem:[%s2631_s4] sm:$0xff] }
 0xa32   :  { %v1327_v45 = vpop.xlane.xlu0 %1326  ;;  %v1345_v53 = vpop.permute.xlu1 %1344 }
 0xa33   :  { %2213 = vpow2.f32 %v1330_v52  ;;  %v1329_v54 = vsub.f32 %v1321_v49, %v1327_v45  ;;  %2044 = vmatpush3.msra.mxu0 %v1345_v53  ;;  %v2126_v49 = vpack.c.bf16 %v1656_v48, %v1655_v47  ;;  %v1747_v52 = vld [vmem:[%s2631_s4 + $0x8] sm:$0xff]  ;;  %v1748_v45 = vld [vmem:[%s2631_s4 + $0x10] sm:$0xff] }
 0xa34   :  { %v2134_v53 = vpack.c.bf16 %v1747_v52, %v1746_v51 }
 0xa35   :  { %v1332_v55 = vmul.f32 1.442695, %v1329_v54  ;;  %v1749_v54 = vld [vmem:[%s2631_s4 + $0x18] sm:$0xff] }
 0xa36   :  { %v1499_v14 = vpop.permute.xlu1 %1498  ;;  %2135 = vmatprep.subr.bf16.mxu0 %v2134_v53 }
 0xa37   :  { %2215 = vpow2.f32 %v1332_v55  ;;  %v1520_v19 = vsel %vm162_vm2, %v2408_v16, %v1499_v14  ;;  %v2138_v55 = vpack.c.bf16 %v1749_v54, %v1748_v45 }
 0xa3a   :  { %v1501_v15 = vpop.permute.xlu1 %1500 }
 0xa3b   :  { %v1521_v24 = vsel %vm162_vm2, %v2410_v18, %v1501_v15 }
 0xa3d   :  { %v2214_v38 = vpop.eup %2213 }
 0xa3e   :  { %v1334_v57 = vsel %vm162_vm2, %v2214_v38, 0.0  ;;  %v1507_v17 = vpop.permute.xlu1 %1506 }
 0xa3f   :  { %1335 = vadd.xlane.f32.xlu0 %v1334_v57  ;;  %v1523_v20 = vsel %vm1522_vm4, %v1520_v19, %v1507_v17  ;;  %v1751_v57 = vld [vmem:[%s2631_s4 + $0x28] sm:$0xff] }
 0xa41   :  { %v2216_v56 = vpop.eup %2215 }
 0xa42   :  { %v1337_v59 = vsel %vm162_vm2, %v2216_v56, 0.0 }
 0xa43   :  { %1338 = vadd.xlane.f32.xlu0 %v1337_v59  ;;  %v1752_v59 = vld [vmem:[%s2631_s4 + $0x30] sm:$0xff] }
 0xa59   :  { %1420 = vrot.lane.b32.xlu0 %v2350_v37, %s2261_s19  ;;  %v1529_v37 = vld [vmem:[%s2629_s2 + $0x8] sm:$0xff] }
 0xa5a   :  { %v2118_v6 = vpack.c.bf16 %v1529_v37, %v1528_v5  ;;  %v1758_v37 = vld [vmem:[%s2631_s4 + $0x60] sm:$0xff] }
 0xa5d   :  { %1508 = vrot.lane.b32.xlu0 %v1158_v35, %s2263_s21 }
 0xacc   :  { %v1336_v58 = vpop.xlane.xlu0 %1335 }
 0xacd   :  { %2217 = vrcp.f32 %v1336_v58  ;;  %v1753_v58 = vld [vmem:[%s2631_s4 + $0x38] sm:$0xff] }
 0xad0   :  { %v1339_v60 = vpop.xlane.xlu0 %1338 }
 0xad1   :  { %2219 = vrcp.f32 %v1339_v60  ;;  %v2146_v60 = vpack.c.bf16 %v1753_v58, %v1752_v59 }
 0xad4   :  { %v1421_v61 = vpop.permute.xlu0 %1420 }
 0xad5   :  { %2049 = vmatpush3.msra.mxu1 %v1421_v61  ;;  %v1754_v61 = vld [vmem:[%s2631_s4 + $0x40] sm:$0xff] }
 0xad6   :  { %2119 = vmatprep.subr.bf16.mxu1 %v2118_v6 }
 0xad7   :  { %v2218_v62 = vpop.eup %2217 }
 0xad8   :  { %v1341_v63 = vmul.f32 %v2218_v62, %v2214_v38  ;;  %v1509_v21 = vpop.permute.xlu0 %1508  ;;  %v1750_v38 = vld [vmem:[%s2631_s4 + $0x20] sm:$0xff]  ;;  %v1755_v62 = vld [vmem:[%s2631_s4 + $0x48] sm:$0xff] }
 0xad9   :  { %v1524_v25 = vsel %vm1522_vm4, %v1521_v24, %v1509_v21 }
 0xada   :  { %2046 = vmatmul.mubr.msk.f32.vlgmr.msra.gmra.mrb[12].mxu0 %vm162_vm2, %v1341_v63  ;;  %v2150_v63 = vpack.c.bf16 %v1755_v62, %v1754_v61 }
 0xadb   :  { %v2220_v2 = vpop.eup %2219  ;;  %2137 = vmatpush3.bf16.msra.mxu0 %v2134_v53 }
 0xadc   :  { %v1343_v3 = vmul.f32 %v2220_v2, %v2216_v56  ;;  %2139 = vmatprep.subr.bf16.mxu0 %v2138_v55  ;;  %v2142_v56 = vpack.c.bf16 %v1751_v57, %v1750_v38  ;;  %v1756_v2 = vld [vmem:[%s2631_s4 + $0x50] sm:$0xff] }
 0xade   :  { %2051 = vmatmul.mubr.msk.f32.vlgmr.msra.gmra.mrb[18].mxu1 %vm162_vm2, %v1343_v3  ;;  %v1757_v3 = vld [vmem:[%s2631_s4 + $0x58] sm:$0xff] }
 0xadf   :  { %2121 = vmatpush3.bf16.msra.mxu1 %v2118_v6  ;;  %2141 = vmatpush3.bf16.msra.mxu0 %v2138_v55  ;;  %v2154_v5 = vpack.c.bf16 %v1757_v3, %v1756_v2  ;;  %v1759_v6 = vld [vmem:[%s2631_s4 + $0x68] sm:$0xff] }
 0xae0   :  { %2123 = vmatprep.subr.bf16.mxu1 %v2122_v9  ;;  %2143 = vmatprep.subr.bf16.mxu0 %v2142_v56  ;;  %v2158_v7 = vpack.c.bf16 %v1759_v6, %v1758_v37 }
 0xae3   :  { %2125 = vmatpush3.bf16.msra.mxu1 %v2122_v9  ;;  %2145 = vmatpush3.bf16.msra.mxu0 %v2142_v56 }
 0xae4   :  { %2127 = vmatprep.subr.bf16.mxu1 %v2126_v49  ;;  %2147 = vmatprep.subr.bf16.mxu0 %v2146_v60 }
 0xae7   :  { %2149 = vmatpush3.bf16.msra.mxu0 %v2146_v60 }
 0xae8   :  { %2151 = vmatprep.subr.bf16.mxu0 %v2150_v63 }
 0xaeb   :  { %2153 = vmatpush3.bf16.msra.mxu0 %v2150_v63 }
 0xaec   :  { %2155 = vmatprep.subr.bf16.mxu0 %v2154_v5 }
 0xaef   :  { %2157 = vmatpush3.bf16.msra.mxu0 %v2154_v5 }
 0xaf0   :  { %2159 = vmatprep.subr.bf16.mxu0 %v2158_v7 }
 0xaf3   :  { %2161 = vmatpush3.bf16.msra.mxu0 %v2158_v7 }
 0xbad   :  { %v1416_v10 = vpop.f32.mrb[12].mxu0 }
 0xbae   :  { %1514 = vrot.lane.b32.xlu1 %v1416_v10, %s2264_s30  ;;  %v2047_v11 = vpop.f32.mrb[13].mxu0 }
 0xbb1   :  { %v1492_v12 = vpop.f32.mrb[18].mxu1 }
 0xbb2   :  { %1516 = vrot.lane.b32.xlu0 %v1492_v12, %s2264_s30  ;;  %v2052_v13 = vpop.f32.mrb[19].mxu1 }
 0xc20   :  { %v1515_v22 = vpop.permute.xlu1 %1514 }
 0xc21   :  { %v1526_v23 = vsel %vm1525_vm5, %v1523_v20, %v1515_v22 }
 0xc22   :  { %2061 = vmatprep.mubr.msk.f32.mxu1 %vm29_vm0, %v1526_v23 }
 0xc24   :  { %v1517_v26 = vpop.permute.xlu0 %1516 }
 0xc25   :  { %v1527_v27 = vsel %vm1525_vm5, %v1524_v25, %v1517_v26  ;;  %v1760_v26 = vld [vmem:[%s2631_s4 + $0x70] sm:$0xff] }
 0xc26   :  { %2062 = vmatmul.mubr.msk.f32.vlgmr.msra.gmra.mrb[20].mxu1 %vm29_vm0, %v1527_v27  ;;  %v1761_v27 = vld [vmem:[%s2631_s4 + $0x78] sm:$0xff]  ;;  %s2266_s4 = smov [#allocation2]  }
 0xc27   :  { %2129 = vmatpush3.bf16.msra.mxu1 %v2126_v49  ;;  %s1850_s23 = sshll.u32 %s2266_s4, 4  ;;  %s1851_s23 = int_to_ptr.vmem [resolvable:$true] %s1850_s23 }
 0xc28   :  { %p2230_p1 = scmp.lt.s32.totalorder %s1851_s23, %s1851_s23 }
 0xcf9   :  { %v2063_v29 = vpop.f32.mrb[20].mxu1 }
 0xcfa   :  { %v1614_v16 = vadd.f32 %v2063_v29, %v1888_v28  ;;  %v1608_v30 = vpop.f32.mrb[21].mxu1  ;;  %v1891_v29 = vld [vmem:[%s2632_s5 + $0x2] ss:$0 sm:$0xff]  ;;  %s2225_s5 = scalar_lea.vmem %s1851_s23, 256 }
 0xcfb   :  { %v1609_v31 = vadd.f32 %v1888_v28, %v1608_v30  ;;  %p2226_p0 = scmp.ne.s32.totalorder %s1851_s23, %s2225_s5  ;;  %p2231_p2 = scmp.lt.s32.totalorder %s2225_s5, %s2225_s5 }
 0xcfc   :  { %v2518_v32 = vadd.f32 %v1614_v16, %v2311_v1 }
 0xcfd   :  { %v2521_v33 = vadd.f32 %v1609_v31, %v2306_v0  ;;  %p2232_p3 = por %p2231_p2, %p2230_p1 }
 0xcfe   :  { %v1622_v18 = vsel %vm29_vm0, %v2518_v32, 0.0 }
 0xcff   :  { %1623 = vadd.xlane.f32.xlu0 %v1622_v18  ;;  %v1619_v34 = vsel %vm29_vm0, %v2521_v33, 0.0  ;;  %p2233_p4 = pnand %p2232_p3, %p2226_p0 }
 0xd00   :  { %1620 = vadd.xlane.f32.xlu1 %v1619_v34 }
 0xd11   :  { %1645 = vrot.lane.b32.xlu1 %v2320_v4, %s2252_s1 }
 0xd15   :  { %1763 = vrot.lane.b32.xlu1 %v1888_v28, %s2249_s27  ;;  %s2265_s27 = smov 32   ;;  %v2162_v28 = vpack.c.bf16 %v1761_v27, %v1760_v26 }
 0xd17   :  { %2163 = vmatprep.subr.bf16.mxu0 %v2162_v28 }
 0xd18   :  { %2165 = vmatpush3.bf16.msra.mxu0 %v2162_v28 }
 0xd8c   :  { %v1624_v35 = vpop.xlane.xlu0 %1623 }
 0xd8d   :  { %v1626_v39 = vmul.f32 0.03125, %v1624_v35  ;;  %v1621_v1 = vpop.xlane.xlu1 %1620 }
 0xd8e   :  { %v1625_v40 = vmul.f32 0.03125, %v1621_v1 }
 0xd8f   :  { %v2531_v0 = vsub.f32 %v2518_v32, %v1626_v39 }
 0xd90   :  { %v2534_v41 = vsub.f32 %v2521_v33, %v1625_v40 }
 0xd91   :  { %v1630_v44 = vmul.f32 %v2531_v0, %v2531_v0  ;;  %v1646_v15 = vpop.permute.xlu1 %1645 }
 0xd92   :  { %v1629_v42 = vmul.f32 %v2534_v41, %v2534_v41 }
 0xd93   :  { %v1634_v46 = vsel %vm29_vm0, %v1630_v44, 0.0 }
 0xd94   :  { %v1631_v43 = vsel %vm29_vm0, %v1629_v42, 0.0 }
 0xd95   :  { %1632 = vadd.xlane.f32.xlu0 %v1631_v43  ;;  %v1764_v39 = vpop.permute.xlu1 %1763 }
 0xd99   :  { %1635 = vadd.xlane.f32.xlu0 %v1634_v46 }
 0xdaf   :  { %1650 = vrot.lane.b32.xlu0 %v2320_v4, %s2265_s27  ;;  %v2130_v4 = vpack.c.bf16 %v1658_v50, %v1657_v36 }
 0xdb1   :  { %2131 = vmatprep.subr.bf16.mxu1 %v2130_v4 }
 0xdb2   :  { %2133 = vmatpush3.bf16.msra.mxu1 %v2130_v4 }
 0xe22   :  { %v1633_v8 = vpop.xlane.xlu0 %1632 }
 0xe23   :  { %v1637_v9 = vmul.f32 0.03125, %v1633_v8 }
 0xe25   :  { %v1639_v10 = vadd.f32 1e-05, %v1637_v9 }
 0xe26   :  { %v1636_v11 = vpop.xlane.xlu0 %1635 }
 0xe27   :  { %2221 = vrsqrt.f32 %v1639_v10  ;;  %v1638_v12 = vmul.f32 0.03125, %v1636_v11 }
 0xe29   :  { %v1640_v13 = vadd.f32 1e-05, %v1638_v12 }
 0xe2a   :  { %v1651_v19 = vpop.permute.xlu0 %1650 }
 0xe2b   :  { %2223 = vrsqrt.f32 %v1640_v13 }
 0xe31   :  { %v2222_v14 = vpop.eup %2221 }
 0xe32   :  { %v1643_v17 = vmul.f32 %v2222_v14, %v2534_v41 }
 0xe34   :  { %v1648_v20 = vmul.f32 %v1646_v15, %v1643_v17 }
 0xe35   :  { %v2224_v21 = vpop.eup %2223 }
 0xe36   :  { %v1644_v22 = vmul.f32 %v2224_v21, %v2531_v0  ;;  %v1653_v23 = vadd.f32 %v1651_v19, %v1648_v20 }
 0xe38   :  { %v1649_v24 = vmul.f32 %v1646_v15, %v1644_v22  ;;  %2072 = vmatprep.mubr.msk.f32.mxu1 %vm29_vm0, %v1653_v23 }
 0xe3a   :  { %v1654_v25 = vadd.f32 %v1651_v19, %v1649_v24 }
 0xe3c   :  { %2073 = vmatmul.mubr.msk.f32.vlgmr.msra.gmra.mrb[22].mxu1 %vm29_vm0, %v1654_v25 }
 0xf0f   :  { %v2074_v16 = vpop.f32.mrb[22].mxu1 }
 0xf10   :  { %v1741_v30 = vadd.f32 %v2074_v16, %v1891_v29  ;;  %v1735_v31 = vpop.f32.mrb[23].mxu1 }
 0xf11   :  { %v1736_v18 = vadd.f32 %v1891_v29, %v1735_v31 }
 0xf12   :  { %v1745_v35 = vmax.f32 %v1741_v30, 0.0 }
 0xf13   :  { %v1744_v34 = vmax.f32 %v1736_v18, 0.0 }
 0xf15   :  { %2107 = vmatprep.mubr.f32.mxu0 %v1744_v34 }
 0xf16   :  { %2108 = vmatmul.mubr.f32.vlgmr.msra.gmra.mrb[14].mxu0 %v1745_v35 }
 0xfe9   :  { %v2109_v1 = vpop.f32.mrb[14].mxu0 }
 0xfea   :  { %v1838_v40 = vadd.f32 %v2109_v1, %v1764_v39  ;;  %v1832_v0 = vpop.f32.mrb[15].mxu0 }
 0xfeb   :  { %v1833_v41 = vadd.f32 %v1832_v0, %v1764_v39 }
 0xfec   :  { %v1842_v42 = vadd.f32 %v1838_v40, %v2518_v32 }
 0xfed   :  { %v1841_v43 = vadd.f32 %v1833_v41, %v2521_v33 }
 0xfee   :  { %1844 = vst.msk [vmem:[#allocation2 + $0x8] sm:$0xff] %vm29_vm0, %v1842_v42 }
 0xfef   :  { %1843 = vst.msk [vmem:[#allocation2] sm:$0xff] %vm29_vm0, %v1841_v43 }
 0xff0   :  { %2236 = shalt.err (!%p2233_p4)
}
 0xff1   :  { %s2237_s25 = scalar_lea.hbm %s2633_s6, 256 }
 0xff2   :  { %p2238_p5 = scmp.ne.s32.totalorder %s2633_s6, %s2237_s25  ;;  %p2241_p6 = scmp.lt.u32.totalorder %s2237_s25, %s2633_s6 }
 0xff4   :  { %p2243_p7 = pnand %p2241_p6, %p2238_p5 }
 0xff6   :  { %2246 = shalt.err (!%p2243_p7)
}
 0xff7   :  { %s2267_s30 = smov 128  }
 0xff8   :  { %1856 = dma.vmem_to_hbm [thread:$0]  %s1851_s23, 256, %s2633_s6, [#allocation3], %s2267_s30, %s2267_s30, %s2262_s20  }
 0xff9   :  { %2247 = dma.done.wait [#allocation3], 256  }
 0xffa   :  { %2248 = vsyncadd [#allocation3], 4294967040 }
 0xffb   :  { %1860 = vsyncpa [#allocation3], 1 }

</bundles_post_ra>
